<compile_context>
chip_gen: v6e
topology: v6e:2x2x1
jax: 0.10.0
libtpu: 0.0.40
codegen_flags: <defaults>
</compile_context>

<pallas_src>
import functools

import jax
import jax.numpy as jnp
from jax.experimental import pallas as pl
from jax.experimental.pallas import tpu as pltpu


def _gated_kernel(*refs, n_kern, dil, lead, tt, n_res, n_cond,
                  r_pad, c_pad, d_pad, has_halo, compute_dtype):
    if has_halo:
        (x_ref, xh_ref, c_ref, ch_ref,
         wf_ref, b_ref, wo_ref, sig_ref, skp_ref) = refs
    else:
        (x_ref, c_ref, wf_ref, b_ref, wo_ref, sig_ref, skp_ref) = refs
        xh_ref = ch_ref = None

    x_m = x_ref[0]            # (R, TX)   time = lanes
    c_m = c_ref[0]            # (C, TX)
    need = tt + lead          # input window needed for this output tile

    # Halo invariant (keep in sync with the wrapper): TT % H == 0 and H >= lead,
    # and the halo block index is clamped only when the halo region would start
    # at or beyond T.  Garbage columns (ragged main block or clamped halo) stay
    # lane-local through the channel contraction and only ever feed output
    # columns >= T_out, which Pallas masks on the partial output block.
    if x_m.shape[1] >= need:
        x_win = x_m[:, :need]
        c_win = c_m[:, :need]
    else:
        pad = need - x_m.shape[1]
        x_win = jnp.concatenate([x_m, xh_ref[0][:, :pad]], axis=1)
        c_win = jnp.concatenate([c_m, ch_ref[0][:, :pad]], axis=1)

    # Pad channel (sublane) dims once so the per-tap stack is vreg-aligned.
    x_cd = x_win.astype(compute_dtype)
    if r_pad > n_res:
        x_cd = jnp.concatenate(
            [x_cd, jnp.zeros((r_pad - n_res, x_cd.shape[1]), compute_dtype)],
            axis=0)
    c_t = c_win[:, lead:lead + tt].astype(compute_dtype)
    if c_pad > n_cond:
        c_t = jnp.concatenate(
            [c_t, jnp.zeros((c_pad - n_cond, tt), compute_dtype)], axis=0)

    # One MXU contraction for filter|gate conv + cond projection: stack the K
    # dilated taps and the cond tile along the contraction (sublane) axis.
    # TODO(synk): for small dilations the k*dil tap offsets are lane-unaligned
    # (XLU rotates); revisit if bundle dumps show the XLU slot saturating.
    taps = [x_cd[:, k * dil:k * dil + tt] for k in range(n_kern)]
    stack = jnp.concatenate(taps + [c_t], axis=0)        # (K*Rp + Cp, TT)

    acc = jnp.dot(wf_ref[...], stack, preferred_element_type=jnp.float32)
    acc = acc + b_ref[...]                               # (2*Dp, TT) f32

    filt = acc[:d_pad]
    gate = acc[d_pad:]
    # sigmoid(g) = 0.5*(1 + tanh(g/2)): one EUP op instead of exp + divide.
    z = jnp.tanh(filt) * (0.5 * jnp.tanh(0.5 * gate) + 0.5)   # (Dp, TT) f32

    # Fused residual|skip 1x1 convolutions: (R+S, TT).
    out = jnp.dot(wo_ref[...], z.astype(compute_dtype),
                  preferred_element_type=jnp.float32)

    resid = x_win[:, lead:lead + tt].astype(jnp.float32)   # residual add in f32
    sig_ref[0] = (out[:n_res] + resid).astype(sig_ref.dtype)
    skp_ref[0] = out[n_res:].astype(skp_ref.dtype)


def prepare_params(params, compute_dtype=jnp.bfloat16):
    """Fuse & re-layout the PyTorch-layout weights once per layer (hoisted).

    Produces one fused gate weight (2*Dp, K*Rp + Cp), an f32 bias (2*Dp, 1) and
    one fused output weight (R+S, Dp), with R/C/D zero-padded to multiples of 8
    so the in-kernel sublane stacking/splits are layout-clean.
    """
    D, R, K = params["w_sig"].shape               # Conv1d weight: (out, in, kern)
    C = params["p_sig"].shape[1]
    S = params["w_skp"].shape[0]

    def rup(a, m):
        return ((a + m - 1) // m) * m

    R_pad, C_pad, D_pad = rup(R, 8), rup(C, 8), rup(D, 8)

    def pad_rows(w, rows):
        return jnp.pad(w, ((0, rows - w.shape[0]),) + ((0, 0),) * (w.ndim - 1))

    def conv_cols(w):   # (D, R, K) -> (D, K*R_pad), col = k*R_pad + r
        w = jnp.transpose(w, (0, 2, 1))                       # (D, K, R)
        w = jnp.pad(w, ((0, 0), (0, 0), (0, R_pad - R)))      # (D, K, R_pad)
        return w.reshape(D, K * R_pad)

    def cond_cols(p):   # (D, C, 1) -> (D, C_pad)
        return jnp.pad(p[:, :, 0], ((0, 0), (0, C_pad - C)))

    w_sig_cols = jnp.concatenate(
        [conv_cols(params["w_sig"]), cond_cols(params["p_sig"])], axis=1)
    w_gate_cols = jnp.concatenate(
        [conv_cols(params["w_gate"]), cond_cols(params["p_gate"])], axis=1)
    w_fused = jnp.concatenate(
        [pad_rows(w_sig_cols, D_pad), pad_rows(w_gate_cols, D_pad)], axis=0)

    bias = jnp.concatenate(
        [pad_rows(params["b_sig"].reshape(D, 1), D_pad),
         pad_rows(params["b_gate"].reshape(D, 1), D_pad)], axis=0)   # (2*Dp, 1)

    w_out = jnp.concatenate(
        [params["w_res"][:, :, 0], params["w_skp"][:, :, 0]], axis=0)  # (R+S, D)
    w_out = jnp.pad(w_out, ((0, 0), (0, D_pad - D)))                   # (R+S, Dp)

    return dict(
        w_fused=w_fused.astype(compute_dtype),
        bias=bias.astype(jnp.float32),
        w_out=w_out.astype(compute_dtype),
        n_kern=int(K), n_res=int(R), n_cond=int(C), n_dil=int(D), n_skp=int(S),
        r_pad=int(R_pad), c_pad=int(C_pad), d_pad=int(D_pad),
        compute_dtype=compute_dtype,
    )


def _vmem_limit_bytes():
    cap = None
    try:
        cap = getattr(pltpu.get_tpu_info(), "vmem_capacity_bytes", None)
    except Exception:
        cap = None
    if not cap:
        cap = 64 * 1024 * 1024        # assume worst case (v7x physical VMEM)
    # ~48 MiB on v7x (64 MiB physical), capped at 64 MiB on v5e/v6e (128 MiB).
    return int(min(cap * 3 // 4, 64 * 1024 * 1024))


def gated_residual_cond_conv(x, cond, prepped, *, dil, t_tile=1024, t_cap=2048):
    """x: (B, R, T), cond: (B, C, T)  (PyTorch NCW, f32 or bf16).

    Returns sig: (B, R, T_out), skp: (B, S, T_out) with T_out = T - (K-1)*dil.
    """
    K, R, C = prepped["n_kern"], prepped["n_res"], prepped["n_cond"]
    S = prepped["n_skp"]
    Rp, Cp, Dp = prepped["r_pad"], prepped["c_pad"], prepped["d_pad"]
    cdt = prepped["compute_dtype"]
    lead = (K - 1) * dil
    B, _, T = x.shape
    T_out = T - lead
    assert T_out > 0, "sequence shorter than receptive field"

    def rup(a, m):
        return ((a + m - 1) // m) * m

    H = rup(max(lead, 1), 128)          # halo block width (lane-aligned, >= lead)
    # Decouple the output tile from the halo: aim for >= 4*lead of output per
    # tile (halo re-read <= 25% of input traffic), capped by t_cap so the f32
    # intermediates stay bounded on v7x's 64 MiB VMEM.
    tt_target = max(t_tile, min(4 * lead, max(t_cap, t_tile)))
    TT = rup(tt_target, H)              # output time tile (multiple of H and 128)
    num_t = pl.cdiv(T_out, TT)
    if B == 1 and num_t == 1 and T_out > H:
        # v7x has 2 TensorCores: keep >= 2 grid steps when possible.
        TT = rup(-(-T_out // 2), H)
        num_t = pl.cdiv(T_out, TT)

    w_specs = [
        pl.BlockSpec(prepped["w_fused"].shape, lambda b, t: (0, 0)),
        pl.BlockSpec(prepped["bias"].shape, lambda b, t: (0, 0)),
        pl.BlockSpec(prepped["w_out"].shape, lambda b, t: (0, 0)),
    ]
    weights = (prepped["w_fused"], prepped["bias"], prepped["w_out"])

    if num_t <= 1:
        # Whole sequence fits one tile: full-length blocks, no halo view needed.
        TT = T_out
        has_halo = False
        grid = (B, 1)
        in_specs = [pl.BlockSpec((1, R, T), lambda b, t: (b, 0, 0)),
                    pl.BlockSpec((1, C, T), lambda b, t: (b, 0, 0))] + w_specs
        operands = (x, cond) + weights
    else:
        assert TT % H == 0 and H >= lead        # halo invariant (see kernel)
        has_halo = lead > 0
        grid = (B, num_t)
        mult = TT // H
        max_h = pl.cdiv(T, H) - 1   # clamp: stale halo only feeds masked cols

        def halo_map(b, t):
            return (b, 0, jnp.minimum((t + 1) * mult, max_h))

        # NOTE(v5e): if profiling shows exposed DMA latency, add
        # pipeline_mode=pl.Buffered(3) to the two TT-wide specs below.
        in_specs = [pl.BlockSpec((1, R, TT), lambda b, t: (b, 0, t))]
        operands = [x]
        if has_halo:
            in_specs.append(pl.BlockSpec((1, R, H), halo_map))
            operands.append(x)
        in_specs.append(pl.BlockSpec((1, C, TT), lambda b, t: (b, 0, t)))
        operands.append(cond)
        if has_halo:
            in_specs.append(pl.BlockSpec((1, C, H), halo_map))
            operands.append(cond)
        in_specs += w_specs
        operands = tuple(operands) + weights

    out_specs = [pl.BlockSpec((1, R, TT), lambda b, t: (b, 0, t)),
                 pl.BlockSpec((1, S, TT), lambda b, t: (b, 0, t))]
    out_shape = (jax.ShapeDtypeStruct((B, R, T_out), x.dtype),
                 jax.ShapeDtypeStruct((B, S, T_out), x.dtype))

    kernel = functools.partial(
        _gated_kernel, n_kern=K, dil=dil, lead=lead, tt=TT, n_res=R, n_cond=C,
        r_pad=Rp, c_pad=Cp, d_pad=Dp, has_halo=has_halo, compute_dtype=cdt)

    itemsize = jnp.dtype(x.dtype).itemsize
    flops = 2 * B * T_out * (2 * Dp * (K * Rp + Cp) + (R + S) * Dp)
    bytes_accessed = (int(x.size) + int(cond.size) + B * (R + S) * T_out) * itemsize
    bytes_accessed += sum(int(w.size) * jnp.dtype(w.dtype).itemsize for w in weights)
    cost = pl.CostEstimate(flops=int(flops),
                           transcendentals=int(2 * B * T_out * Dp),
                           bytes_accessed=int(bytes_accessed))

    sig, skp = pl.pallas_call(
        kernel,
        out_shape=out_shape,
        grid_spec=pltpu.PrefetchScalarGridSpec(
            num_scalar_prefetch=0,
            grid=grid,
            in_specs=in_specs,
            out_specs=out_specs),
        compiler_params=pltpu.CompilerParams(
            dimension_semantics=("parallel", "parallel"),
            vmem_limit_bytes=_vmem_limit_bytes()),
        cost_estimate=cost,
    )(*operands)
    return sig, skp


def _reference(x, cond, params, *, n_kern, dil):
    """Pure-JAX reference mirroring the PyTorch forward (NCW layout)."""
    lead = (n_kern - 1) * dil
    T = x.shape[-1]
    T_out = T - lead
    cond_t = cond[:, :, lead:]
    hi = "highest"

    def dilated_conv(inp, w, b):
        out = jnp.zeros((inp.shape[0], w.shape[0], T_out), jnp.float32)
        for k in range(n_kern):
            out = out + jnp.einsum("oi,bit->bot", w[:, :, k],
                                   inp[:, :, k * dil:k * dil + T_out], precision=hi)
        if b is not None:
            out = out + b[None, :, None]
        return out

    filt = dilated_conv(x, params["w_sig"], params["b_sig"]) + \
        jnp.einsum("oc,bct->bot", params["p_sig"][:, :, 0], cond_t, precision=hi)
    gate = dilated_conv(x, params["w_gate"], params["b_gate"]) + \
        jnp.einsum("oc,bct->bot", params["p_gate"][:, :, 0], cond_t, precision=hi)
    z = jnp.tanh(filt) * jax.nn.sigmoid(gate)
    sig = jnp.einsum("rd,bdt->brt", params["w_res"][:, :, 0], z, precision=hi) \
        + x[:, :, lead:]
    skp = jnp.einsum("sd,bdt->bst", params["w_skp"][:, :, 0], z, precision=hi)
    return sig, skp


def _make_params(key, *, n_cond, n_kern, n_res, n_dil, n_skp):
    keys = jax.random.split(key, 8)
    return {
        # PyTorch Conv1d weight layout: (out_ch, in_ch, kern)
        "w_sig": jax.random.normal(keys[0], (n_dil, n_res, n_kern), jnp.float32) * 0.3,
        "w_gate": jax.random.normal(keys[1], (n_dil, n_res, n_kern), jnp.float32) * 0.3,
        "b_sig": jax.random.normal(keys[2], (n_dil,), jnp.float32) * 0.1,
        "b_gate": jax.random.normal(keys[3], (n_dil,), jnp.float32) * 0.1,
        "p_sig": jax.random.normal(keys[4], (n_dil, n_cond, 1), jnp.float32) * 0.3,
        "p_gate": jax.random.normal(keys[5], (n_dil, n_cond, 1), jnp.float32) * 0.3,
        "w_res": jax.random.normal(keys[6], (n_res, n_dil, 1), jnp.float32) * 0.3,
        "w_skp": jax.random.normal(keys[7], (n_skp, n_dil, 1), jnp.float32) * 0.3,
    }


if __name__ == "__main__":
    root = jax.random.PRNGKey(0)

    # --- Case 1: small shapes (single time tile); f32/bf16 compute + bf16 I/O. ---
    B, T = 2, 16
    n_cond, n_kern, n_res, n_dil, n_skp, dil = 4, 2, 4, 8, 4, 2
    # NOTE: the module's `stride` ctor arg is unused in its forward (Conv1d stride=1).
    kp, kx, kc, k2 = jax.random.split(root, 4)
    params = _make_params(kp, n_cond=n_cond, n_kern=n_kern, n_res=n_res,
                          n_dil=n_dil, n_skp=n_skp)
    x = jax.random.normal(kx, (B, n_res, T), jnp.float32)
    cond = jax.random.normal(kc, (B, n_cond, T), jnp.float32)
    sig_ref, skp_ref = _reference(x, cond, params, n_kern=n_kern, dil=dil)
    T_out = T - (n_kern - 1) * dil

    prepped_f32 = prepare_params(params, compute_dtype=jnp.float32)
    sig, skp = gated_residual_cond_conv(x, cond, prepped_f32, dil=dil)
    sig, skp = jax.block_until_ready((sig, skp))
    assert sig.shape == (B, n_res, T_out) and skp.shape == (B, n_skp, T_out)
    assert jnp.allclose(sig, sig_ref, atol=1e-4, rtol=1e-4)
    assert jnp.allclose(skp, skp_ref, atol=1e-4, rtol=1e-4)

    prepped_bf16 = prepare_params(params, compute_dtype=jnp.bfloat16)
    sig16, skp16 = gated_residual_cond_conv(x, cond, prepped_bf16, dil=dil)
    sig16, skp16 = jax.block_until_ready((sig16, skp16))
    assert jnp.allclose(sig16, sig_ref, atol=5e-2, rtol=5e-2)
    assert jnp.allclose(skp16, skp_ref, atol=5e-2, rtol=5e-2)

    # bf16 activation I/O (halved HBM traffic); residual add stays f32 in-kernel.
    sig_io, skp_io = gated_residual_cond_conv(
        x.astype(jnp.bfloat16), cond.astype(jnp.bfloat16), prepped_bf16, dil=dil)
    sig_io, skp_io = jax.block_until_ready((sig_io, skp_io))
    assert sig_io.dtype == jnp.bfloat16 and skp_io.dtype == jnp.bfloat16
    assert jnp.allclose(sig_io.astype(jnp.float32), sig_ref, atol=3e-1, rtol=3e-1)
    assert jnp.allclose(skp_io.astype(jnp.float32), skp_ref, atol=3e-1, rtol=3e-1)

    # --- Case 2: longer sequence -> time-tiled grid with halo blocks, block-index
    #     clamping, and a ragged final tile. ---
    B2, T2, dil2 = 2, 1000, 64
    n_cond2, n_res2, n_dil2, n_skp2 = 8, 8, 16, 8
    kp2, kx2, kc2 = jax.random.split(k2, 3)
    params2 = _make_params(kp2, n_cond=n_cond2, n_kern=n_kern, n_res=n_res2,
                           n_dil=n_dil2, n_skp=n_skp2)
    x2 = jax.random.normal(kx2, (B2, n_res2, T2), jnp.float32)
    cond2 = jax.random.normal(kc2, (B2, n_cond2, T2), jnp.float32)
    prepped2 = prepare_params(params2, compute_dtype=jnp.float32)
    sig2, skp2 = gated_residual_cond_conv(x2, cond2, prepped2, dil=dil2, t_tile=256)
    sig2, skp2 = jax.block_until_ready((sig2, skp2))
    sig2_ref, skp2_ref = _reference(x2, cond2, params2, n_kern=n_kern, dil=dil2)
    T2_out = T2 - (n_kern - 1) * dil2
    assert sig2.shape == (B2, n_res2, T2_out) and skp2.shape == (B2, n_skp2, T2_out)
    assert jnp.allclose(sig2, sig2_ref, atol=2e-2, rtol=2e-2)
    assert jnp.allclose(skp2, skp2_ref, atol=2e-2, rtol=2e-2)

    # --- Case 3: B == 1 with default t_tile -> the time axis is split into two
    #     tiles (keeps both v7x TensorCores busy) and exercises halo clamping on
    #     the ragged final tile. ---
    B3, T3, dil3 = 1, 700, 8
    kp3, kx3, kc3 = jax.random.split(jax.random.fold_in(root, 3), 3)
    params3 = _make_params(kp3, n_cond=8, n_kern=2, n_res=8, n_dil=16, n_skp=8)
    x3 = jax.random.normal(kx3, (B3, 8, T3), jnp.float32)
    cond3 = jax.random.normal(kc3, (B3, 8, T3), jnp.float32)
    prepped3 = prepare_params(params3, compute_dtype=jnp.float32)
    sig3, skp3 = gated_residual_cond_conv(x3, cond3, prepped3, dil=dil3)
    sig3, skp3 = jax.block_until_ready((sig3, skp3))
    sig3_ref, skp3_ref = _reference(x3, cond3, params3, n_kern=2, dil=dil3)
    assert jnp.allclose(sig3, sig3_ref, atol=2e-2, rtol=2e-2)
    assert jnp.allclose(skp3, skp3_ref, atol=2e-2, rtol=2e-2)

    print("KERNEL_OK")
</pallas_src>

<mosaic_0001>
module attributes {stable_mosaic.version = 11 : i64} {
  func.func @_gated_kernel(%arg0: i32, %arg1: i32, %arg2: memref<1x4x16xf32, #tpu.memory_space<vmem>>, %arg3: memref<1x4x16xf32, #tpu.memory_space<vmem>>, %arg4: memref<16x24xf32, #tpu.memory_space<vmem>>, %arg5: memref<16x1xf32, #tpu.memory_space<vmem>>, %arg6: memref<8x8xf32, #tpu.memory_space<vmem>>, %arg7: memref<1x4x14xf32, #tpu.memory_space<vmem>>, %arg8: memref<1x4x14xf32, #tpu.memory_space<vmem>>) attributes {dimension_semantics = [#tpu.dimension_semantics<parallel>, #tpu.dimension_semantics<parallel>], iteration_bounds = array<i64: 2, 1>, scalar_prefetch = 0 : i64, scratch_operands = 0 : i64, tpu.core_type = #tpu.core_type<tc>, window_params = [{transform_indices = @transform_0, window_bounds = array<i64: 1, 4, 16>}, {transform_indices = @transform_1, window_bounds = array<i64: 1, 4, 16>}, {pipeline_mode = #tpu.pipeline_mode<synchronous>, transform_indices = @transform_2, window_bounds = array<i64: 16, 24>}, {pipeline_mode = #tpu.pipeline_mode<synchronous>, transform_indices = @transform_3, window_bounds = array<i64: 16, 1>}, {pipeline_mode = #tpu.pipeline_mode<synchronous>, transform_indices = @transform_4, window_bounds = array<i64: 8, 8>}, {transform_indices = @transform_5, window_bounds = array<i64: 1, 4, 14>}, {transform_indices = @transform_6, window_bounds = array<i64: 1, 4, 14>}]} {
    %c0 = arith.constant 0 : index
    %c0_0 = arith.constant 0 : index
    %c0_1 = arith.constant 0 : index
    %0 = vector.load %arg2[%c0, %c0_0, %c0_1] : memref<1x4x16xf32, #tpu.memory_space<vmem>>, vector<1x4x16xf32>
    %1 = vector.shape_cast %0 : vector<1x4x16xf32> to vector<4x16xf32>
    %c0_2 = arith.constant 0 : index
    %c0_3 = arith.constant 0 : index
    %c0_4 = arith.constant 0 : index
    %2 = vector.load %arg3[%c0_2, %c0_3, %c0_4] : memref<1x4x16xf32, #tpu.memory_space<vmem>>, vector<1x4x16xf32>
    %3 = vector.shape_cast %2 : vector<1x4x16xf32> to vector<4x16xf32>
    %cst = arith.constant 0.000000e+00 : f32
    %4 = vector.broadcast %cst : f32 to vector<4x16xf32>
    %5 = tpu.concatenate %1, %4 in 0 : vector<4x16xf32>, vector<4x16xf32> -> vector<8x16xf32>
    %6 = vector.extract_strided_slice %3 {offsets = [0, 2], sizes = [4, 14], strides = [1, 1]} : vector<4x16xf32> to vector<4x14xf32>
    %cst_5 = arith.constant 0.000000e+00 : f32
    %7 = vector.broadcast %cst_5 : f32 to vector<4x14xf32>
    %8 = tpu.concatenate %6, %7 in 0 : vector<4x14xf32>, vector<4x14xf32> -> vector<8x14xf32>
    %9 = vector.extract_strided_slice %5 {offsets = [0, 0], sizes = [8, 14], strides = [1, 1]} : vector<8x16xf32> to vector<8x14xf32>
    %10 = vector.extract_strided_slice %5 {offsets = [0, 2], sizes = [8, 14], strides = [1, 1]} : vector<8x16xf32> to vector<8x14xf32>
    %11 = tpu.concatenate %9, %10, %8 in 0 : vector<8x14xf32>, vector<8x14xf32>, vector<8x14xf32> -> vector<24x14xf32>
    %c0_6 = arith.constant 0 : index
    %c0_7 = arith.constant 0 : index
    %12 = vector.load %arg4[%c0_6, %c0_7] : memref<16x24xf32, #tpu.memory_space<vmem>>, vector<16x24xf32>
    %cst_8 = arith.constant dense<0.000000e+00> : vector<16x14xf32>
    %13 = tpu.matmul %12, %11, %cst_8 {dimension_numbers = #tpu.dot_dimension_numbers<[1], [0], [0], [1], [0, 0, 1, 1], [], []>} : vector<16x24xf32>, vector<24x14xf32>, vector<16x14xf32> -> vector<16x14xf32>
    %c0_9 = arith.constant 0 : index
    %c0_10 = arith.constant 0 : index
    %14 = vector.load %arg5[%c0_9, %c0_10] : memref<16x1xf32, #tpu.memory_space<vmem>>, vector<16x1xf32>
    %15 = vector.broadcast %14 : vector<16x1xf32> to vector<16x14xf32>
    %16 = arith.addf %13, %15 : vector<16x14xf32>
    %17 = vector.extract_strided_slice %16 {offsets = [0, 0], sizes = [8, 14], strides = [1, 1]} : vector<16x14xf32> to vector<8x14xf32>
    %18 = vector.extract_strided_slice %16 {offsets = [8, 0], sizes = [8, 14], strides = [1, 1]} : vector<16x14xf32> to vector<8x14xf32>
    %19 = math.tanh %17 : vector<8x14xf32>
    %cst_11 = arith.constant 5.000000e-01 : f32
    %20 = vector.broadcast %cst_11 : f32 to vector<8x14xf32>
    %21 = arith.mulf %20, %18 : vector<8x14xf32>
    %22 = math.tanh %21 : vector<8x14xf32>
    %cst_12 = arith.constant 5.000000e-01 : f32
    %23 = vector.broadcast %cst_12 : f32 to vector<8x14xf32>
    %24 = arith.mulf %23, %22 : vector<8x14xf32>
    %cst_13 = arith.constant 5.000000e-01 : f32
    %25 = vector.broadcast %cst_13 : f32 to vector<8x14xf32>
    %26 = arith.addf %24, %25 : vector<8x14xf32>
    %27 = arith.mulf %19, %26 : vector<8x14xf32>
    %c0_14 = arith.constant 0 : index
    %c0_15 = arith.constant 0 : index
    %28 = vector.load %arg6[%c0_14, %c0_15] : memref<8x8xf32, #tpu.memory_space<vmem>>, vector<8x8xf32>
    %cst_16 = arith.constant dense<0.000000e+00> : vector<8x14xf32>
    %29 = tpu.matmul %28, %27, %cst_16 {dimension_numbers = #tpu.dot_dimension_numbers<[1], [0], [0], [1], [0, 0, 1, 1], [], []>} : vector<8x8xf32>, vector<8x14xf32>, vector<8x14xf32> -> vector<8x14xf32>
    %30 = vector.extract_strided_slice %1 {offsets = [0, 2], sizes = [4, 14], strides = [1, 1]} : vector<4x16xf32> to vector<4x14xf32>
    %31 = vector.extract_strided_slice %29 {offsets = [0, 0], sizes = [4, 14], strides = [1, 1]} : vector<8x14xf32> to vector<4x14xf32>
    %32 = arith.addf %31, %30 : vector<4x14xf32>
    %c0_17 = arith.constant 0 : index
    %c0_18 = arith.constant 0 : index
    %c0_19 = arith.constant 0 : index
    %33 = vector.load %arg7[%c0_17, %c0_18, %c0_19] : memref<1x4x14xf32, #tpu.memory_space<vmem>>, vector<1x4x14xf32>
    %34 = vector.shape_cast %33 : vector<1x4x14xf32> to vector<4x14xf32>
    %35 = vector.shape_cast %32 : vector<4x14xf32> to vector<1x4x14xf32>
    tpu.vector_store %arg7[%c0_17, %c0_18, %c0_19], %35 {strides = array<i32>} : memref<1x4x14xf32, #tpu.memory_space<vmem>>, vector<1x4x14xf32>,
    %36 = vector.extract_strided_slice %29 {offsets = [4, 0], sizes = [4, 14], strides = [1, 1]} : vector<8x14xf32> to vector<4x14xf32>
    %c0_20 = arith.constant 0 : index
    %c0_21 = arith.constant 0 : index
    %c0_22 = arith.constant 0 : index
    %37 = vector.load %arg8[%c0_20, %c0_21, %c0_22] : memref<1x4x14xf32, #tpu.memory_space<vmem>>, vector<1x4x14xf32>
    %38 = vector.shape_cast %37 : vector<1x4x14xf32> to vector<4x14xf32>
    %39 = vector.shape_cast %36 : vector<4x14xf32> to vector<1x4x14xf32>
    tpu.vector_store %arg8[%c0_20, %c0_21, %c0_22], %39 {strides = array<i32>} : memref<1x4x14xf32, #tpu.memory_space<vmem>>, vector<1x4x14xf32>,
    return
  }
  func.func @transform_0(%arg0: i32, %arg1: i32) -> (i32, i32, i32) {
    %c0_i32 = arith.constant 0 : i32
    %c0_i32_0 = arith.constant 0 : i32
    %c0_i32_1 = arith.constant 0 : i32
    return %arg0, %c0_i32, %c0_i32_0 : i32, i32, i32
  }
  func.func @transform_1(%arg0: i32, %arg1: i32) -> (i32, i32, i32) {
    %c0_i32 = arith.constant 0 : i32
    %c0_i32_0 = arith.constant 0 : i32
    %c0_i32_1 = arith.constant 0 : i32
    return %arg0, %c0_i32, %c0_i32_0 : i32, i32, i32
  }
  func.func @transform_2(%arg0: i32, %arg1: i32) -> (i32, i32) {
    %c0_i32 = arith.constant 0 : i32
    %c0_i32_0 = arith.constant 0 : i32
    %c0_i32_1 = arith.constant 0 : i32
    return %c0_i32, %c0_i32_0 : i32, i32
  }
  func.func @transform_3(%arg0: i32, %arg1: i32) -> (i32, i32) {
    %c0_i32 = arith.constant 0 : i32
    %c0_i32_0 = arith.constant 0 : i32
    %c0_i32_1 = arith.constant 0 : i32
    return %c0_i32, %c0_i32_0 : i32, i32
  }
  func.func @transform_4(%arg0: i32, %arg1: i32) -> (i32, i32) {
    %c0_i32 = arith.constant 0 : i32
    %c0_i32_0 = arith.constant 0 : i32
    %c0_i32_1 = arith.constant 0 : i32
    return %c0_i32, %c0_i32_0 : i32, i32
  }
  func.func @transform_5(%arg0: i32, %arg1: i32) -> (i32, i32, i32) {
    %c0_i32 = arith.constant 0 : i32
    %c0_i32_0 = arith.constant 0 : i32
    return %arg0, %c0_i32, %arg1 : i32, i32, i32
  }
  func.func @transform_6(%arg0: i32, %arg1: i32) -> (i32, i32, i32) {
    %c0_i32 = arith.constant 0 : i32
    %c0_i32_0 = arith.constant 0 : i32
    return %arg0, %c0_i32, %arg1 : i32, i32, i32
  }
}

</mosaic_0001>

<bundles_post_ra>
// kernel: tpu_custom_call.1
= control target key start
LH: loop header
LB: loop body
LE: loop exit
PB: predicated region body
PF: predicated region fallthrough
CT: control target
= control target key end

     0   :  { %s1273_s0 = inlined_call_operand.hbm [shape: f32[2,4,16], index: 0, kind: input, shape index: {}]   ;;  %s1274_s1 = inlined_call_operand.hbm [shape: f32[2,4,16], index: 1, kind: input, shape index: {}]   ;;  %s1275_s2 = inlined_call_operand.vmem [shape: f32[16,24], index: 2, kind: input, shape index: {}]   ;;  %s1276_s3 = inlined_call_operand.vmem [shape: f32[16,1], index: 3, kind: input, shape index: {}]   ;;  %s1277_s4 = inlined_call_operand.vmem [shape: f32[8,8], index: 4, kind: input, shape index: {}]   ;;  %s1278_s5 = inlined_call_operand.hbm [shape: f32[2,4,14], index: 5, kind: output, shape index: {0}]   ;;  %s1279_s6 = inlined_call_operand.hbm [shape: f32[2,4,14], index: 6, kind: output, shape index: {1}]  }
   0x1   :  { %1281 = sst [smem:[#allocation15_spill]] %s1273_s0 }
   0x2   :  { %12 = vsyncpa [#allocation3], 0 }
   0x3   :  { %14 = vsyncpa [#allocation3 + $0x1], 0 }
   0x4   :  { %15 = vsyncpa [#allocation6], 0 }
   0x5   :  { %17 = vsyncpa [#allocation6 + $0x1], 0 }
   0x6   :  { %18 = vsyncpa [#allocation4], 0 }
   0x7   :  { %20 = vsyncpa [#allocation4 + $0x1], 0 }
   0x8   :  { %21 = vsyncpa [#allocation9], 0 }
   0x9   :  { %23 = vsyncpa [#allocation9 + $0x1], 0  ;;  %s1040_s21 = smov 0   ;;  %s1042_s22 = smov 0  }
   0xa   :  { %s1044_s23 = smov 0   ;;  %s1046_s24 = smov 0  }
   0xb   :  { %s1048_s25 = smov 0   ;;  %s1050_s26 = smov 0  }
   0xc LB: > { %s699_s27 = sadd.s32 4294967295, %s995_s26   ;;  %s700_s28 = sadd.s32 4294967294, %s995_s26   ;;  %s995_s26 = sphi %s1050_s26, %s29_s26   ;;  %s991_s25 = sphi %s1048_s25, %s1296_s25   ;;  %s987_s24 = sphi %s1046_s24, %s1295_s24   ;;  %s983_s23 = sphi %s1044_s23, %s1294_s23   ;;  %s979_s22 = sphi %s1042_s22, %s1293_s22   ;;  %s975_s21 = sphi %s1040_s21, %s1292_s21  }
   0xd   : > { %s41_s29 = sadd.s32 1, %s991_s25  ;;  %s48_s30 = sadd.s32 1, %s983_s23 }
   0xe   : > { %p43_p0 = scmp.ge.s32.totalorder %s41_s29, 2  ;;  %p55_p1 = scmp.ne.s32.totalorder %s983_s23, %s979_s22 }
   0xf   : > { %p56_p2 = scmp.eq.s32.totalorder %s995_s26, 0  ;;  %p61_p3 = scmp.ne.s32.totalorder %s979_s22, %s975_s21 }
  0x10   : > { %s1298_s29 = smov (%p43_p0, %s41_s29), 0  ;;  %p62_p5 = scmp.eq.s32.totalorder %s699_s27, 0 }
  0x11   : > { %1282 = sst [smem:[#allocation14_spill]] %s1298_s29  ;;  %p1081_p4 = por %p56_p2, %p55_p1 }
  0x12   : > { %s45_s8 = ssub.s32 %s991_s25, %s1298_s29  ;;  %p176_p6 = scmp.eq.s32.totalorder %s699_s27, 1 }
  0x13   : > { %p46_p7 = scmp.eq.s32.totalorder %s45_s8, 0  ;;  %p1087_p8 = por %p62_p5, %p61_p3 }
  0x14   : > { %p1091_p9 = por %p176_p6, %p55_p1  ;;  %p182_p10 = scmp.eq.s32.totalorder %s700_s28, 1 }
  0x15   : > { %s1096_s11 = scalar_select %p46_p7, %s983_s23, %s48_s30  }
  0x16   : > { %p1098_p11 = por %p182_p10, %p61_p3  ;;  %p765_p13 = scmp.lt.s32.totalorder %s995_s26, 2 }
  0x17   : > { %s1105_s13 = sand.u32 1, %s983_s23   ;;  %s704_s15 = sshll.u32 %s991_s25, 6 }
  0x18   : > { %s703_s14 = sshll.u32 %s1105_s13, 2  ;;  %s1287_s0 = sld [smem:[#allocation15_spill]] }
  0x19   : > { %s243_s19 = scalar_lea.vmem [#allocation2], %s703_s14  ;;  %p1114_p0 = pnand %p765_p13, %p1081_p4 }
  0x1a   : > { %s250_s20 = sshll.u32 %s243_s19, 4  ;;  %p707_p1 = scmp.ge.s32.totalorder %s995_s26, 1  ;;  %s251_s20 = int_to_ptr.vmem [resolvable:$true] %s250_s20 }
  0x1b   : > { %p273_p2 = scmp.lt.s32.totalorder %s995_s26, 3  ;;  %s240_s28 = scalar_lea.sflag [#allocation3], %s1105_s13 }
  0x1c   : > { %p827_p3 = pneg %p1114_p0  ;;  %s838_s30 = scalar_lea.vmem %s251_s20, 64 }
  0x1d   : > { %p839_p5 = scmp.ne.s32.totalorder %s251_s20, %s838_s30  ;;  %s997_s8 = smov [#allocation2]  }
  0x1e   : > { %s248_s18 = scalar_lea.hbm %s1287_s0, %s704_s15  ;;  %s843_s16 = sshll.u32 %s997_s8, 4  ;;  %s844_s16 = int_to_ptr.vmem [resolvable:$false] %s843_s16 }
  0x1f   : > { %p841_p6 = pnand %p839_p5, %p827_p3  ;;  %s845_s7 = scalar_lea.vmem %s844_s16, 128 }
  0x20   : > { %p846_p4 = scmp.lt.s32.totalorder %s251_s20, %s844_s16  ;;  %p847_p10 = scmp.lt.s32.totalorder %s845_s7, %s838_s30 }
  0x21   : > { %p842_p7 = pneg %p841_p6 }
  0x22   : > { %p848_p13 = por %p847_p10, %p846_p4 }
  0x24   : > { %p849_p12 = pnand %p848_p13, %p842_p7 }
  0x26   : > { %852 = shalt.err (!%p849_p12)
}
  0x27   : > { %754 = dma.hbm_to_vmem [thread:$0]  (!%p1114_p0), %s248_s18, 64, %s251_s20, %s240_s28  }
  0x28   : > { %p1132_p5 = pnand %p707_p1, %p273_p2  ;;  %s266_s30 = scalar_lea.hbm %s1274_s1, %s704_s15 }
  0x29   : > { %s261_s16 = scalar_lea.vmem [#allocation5], %s703_s14  ;;  %s258_s0 = scalar_lea.sflag [#allocation6], %s1105_s13 }
  0x2a   : > { %s268_s7 = sshll.u32 %s261_s16, 4  ;;  %s998_s18 = smov [#allocation5]   ;;  %s269_s7 = int_to_ptr.vmem [resolvable:$true] %s268_s7 }
  0x2b   : > { %s866_s29 = scalar_lea.vmem %s269_s7, 64  ;;  %s871_s20 = sshll.u32 %s998_s18, 4  ;;  %s872_s20 = int_to_ptr.vmem [resolvable:$false] %s871_s20 }
  0x2c   : > { %p867_p12 = scmp.ne.s32.totalorder %s269_s7, %s866_s29  ;;  %s873_s28 = scalar_lea.vmem %s872_s20, 128 }
  0x2d   : > { %p874_p1 = scmp.lt.s32.totalorder %s269_s7, %s872_s20  ;;  %p875_p2 = scmp.lt.s32.totalorder %s873_s28, %s866_s29 }
  0x2e   : > { %p869_p6 = pnand %p867_p12, %p827_p3 }
  0x2f   : > { %p876_p4 = por %p875_p2, %p874_p1 }
  0x30   : > { %p870_p7 = pneg %p869_p6 }
  0x32   : > { %p877_p10 = pnand %p876_p4, %p870_p7 }
  0x34   : > { %880 = shalt.err (!%p877_p10)
}
  0x35   : > { %757 = dma.hbm_to_vmem [thread:$0]  (!%p1114_p0), %s266_s30, 64, %s269_s7, %s258_s0  }
  0x36   : > { %277 = sbr.rel (%p1132_p5) target bundleno = 634 (0x27a), region = 40  ;;  %s1148_s13 = sand.u32 (!%p1132_p5), 1, %s979_s22  }
  0x37   : > { %s1151_s14 = sshll.u32 (!%p1132_p5), %s1148_s13, 2  ;;  %s280_s15 = scalar_lea.sflag (!%p1132_p5), [#allocation3], %s1148_s13 }
  0x38   : > { %s283_s29 = scalar_lea.vmem (!%p1132_p5), [#allocation2], %s1151_s14 }
  0x3b   : > { %958 = dma.done.wait (%p1087_p8), %s280_s15, 64  }
  0x3c   : > { %960 = vsyncadd (%p1087_p8), %s280_s15, 4294967232  ;;  %s289_s0 = scalar_lea.sflag [#allocation6], %s1148_s13  ;;  %s292_s27 = scalar_lea.vmem [#allocation5], %s1151_s14 }
  0x3d   : > { %962 = dma.done.wait (%p1087_p8), %s289_s0, 64  }
  0x3e   : > { %964 = vsyncadd (%p1087_p8), %s289_s0, 4294967232  ;;  %vm333_vm0 = vcmask 1043456   ;;  %vm358_vm1 = vcmask 195584   ;;  %v999_v0 = vmov 0   ;;  %v332_v1 = vld [vmem:[%s292_s27] sm:$0xf] }
  0x3f   : > { %819 = vset.pattern.permute.xlu1 %v999_v0  ;;  %820 = vset.pattern.permute.xlu0 %v999_v0  ;;  %v331_v2 = vld [vmem:[%s283_s29] sm:$0xf]  ;;  %v335_v4 = vsel %vm333_vm0, %v332_v1, 0.0  ;;  %v347_v5 = vld [vmem:[%s1276_s3 + $0x8] sm:$0xff]  ;;  %s1000_s9 = smov 126   ;;  %v1001_v11 = vmov 0.0  }
  0x40   : > { %v344_v3 = vld [vmem:[%s1275_s2] sm:$0xff]  ;;  %341 = vrot.lane.b32.xlu0 %v335_v4, %s1000_s9  ;;  %355 = vperm.xlu1 %819, %v347_v5   ;;  %v334_v6 = vsel %vm333_vm0, %v331_v2, 0.0  ;;  %v345_v10 = vld [vmem:[%s1275_s2 + $0x8] sm:$0xff]  ;;  %vm1002_vm2 = vmmov 0   ;;  %vm447_vm3 = vcmask 64512   ;;  %s718_s29 = sshll.u32 %s987_s24, 6 }
  0x41   : > { %735 = vmatprep.mubr.msk.f32.mxu0 %vm358_vm1, %v344_v3  ;;  %v346_v7 = vld [vmem:[%s1276_s3] sm:$0xff]  ;;  %738 = vmatprep.subr.mxu1 %v1001_v11  ;;  %s330_s0 = scalar_lea.vmem [#allocation8], %s1151_s14  ;;  %vm528_vm4 = vcmask 113668   ;;  %s323_s17 = scalar_lea.vmem [#allocation7], %s1151_s14  ;;  %vm526_vm5 = vcmask 109568  }
  0x42   : > { %740 = vmatprep.mubr.msk.f32.mxu1 %vm1002_vm2, %v1001_v11  ;;  %v446_v24 = vld [vmem:[%s1277_s4] sm:$0xff]  ;;  %s564_s27 = sshll.u32 %s330_s0, 4  ;;  %s550_s19 = sshll.u32 %s323_s17, 4  ;;  %s1196_s27 = int_to_ptr.vmem [resolvable:$true] %s564_s27  ;;  %s1203_s19 = int_to_ptr.vmem [resolvable:$true] %s550_s19 }
  0x43   : > { %s1201_s7 = scalar_lea.hbm %s1278_s5, %s718_s29  ;;  %s536_s18 = scalar_lea.sflag [#allocation9], %s1148_s13 }
  0x44   : > { %337 = vrot.lane.b32.xlu0 %v334_v6, %s1000_s9  ;;  %350 = vperm.xlu1 %819, %v346_v7   ;;  %s881_s20 = scalar_lea.vmem %s1196_s27, 64  ;;  %s1003_s28 = smov [#allocation8]  }
  0x45   : > { %p882_p8 = scmp.ne.s32.totalorder %s1196_s27, %s881_s20  ;;  %s885_s15 = sshll.u32 %s1003_s28, 4  ;;  %s886_s15 = int_to_ptr.vmem [resolvable:$false] %s885_s15 }
  0x46   : > { %s887_s8 = scalar_lea.vmem %s886_s15, 128  ;;  %p888_p13 = scmp.lt.s32.totalorder %s1196_s27, %s886_s15 }
  0x47   : > { %p883_p0 = pnand %p882_p8, %p1091_p9  ;;  %p889_p5 = scmp.lt.s32.totalorder %s887_s8, %s881_s20 }
  0x48   : > { %522 = vrot.lane.b32.xlu0 %v331_v2, %s1000_s9  ;;  %s1194_s9 = scalar_lea.hbm %s1279_s6, %s718_s29 }
  0x49   : > { %p884_p3 = pneg %p883_p0  ;;  %p890_p12 = por %p889_p5, %p888_p13 }
  0x4b   : > { %p891_p6 = pnand %p890_p12, %p884_p3 }
  0xb2   : > { %v342_v8 = vpop.permute.xlu0 %341 }
  0xb3   : > { %729 = vmatprep.subr.mxu0 %v342_v8 }
  0xb4   : > { %730 = vmatpush3.msra.mxu0 %v342_v8 }
  0xb6   : > { %v338_v9 = vpop.permute.xlu0 %337 }
  0xb7   : > { %731 = vmatprep.subr.mxu0 %v338_v9 }
  0xb8   : > { %732 = vmatpush3.msra.mxu0 %v338_v9 }
  0xb9   : > { %733 = vmatprep.subr.msk.mxu0 %vm333_vm0, %v331_v2 }
  0xba   : > { %734 = vmatpush3.msk.msra.mxu0 %vm333_vm0, %v331_v2  ;;  %v523_v25 = vpop.permute.xlu0 %522 }
  0xbb   : > { %736 = vmatmul.mubr.msk.f32.vlgmr.msra.gmra.mxu0 %vm358_vm1, %v345_v10  ;;  %v356_v12 = vpop.permute.xlu1 %355 }
  0xbf   : > { %v351_v17 = vpop.permute.xlu1 %350 }
 0x17b   : > { %v737_v13 = vpop.f32.mrf.mxu0 }
 0x17c   : > { %v437_v14 = vadd.f32 %v737_v13, %v356_v12 }
 0x17d   : > { %v431_v15 = vpop.f32.mrf.mxu0 }
 0x17e   : > { %v441_v16 = vmul.f32 0.5, %v437_v14  ;;  %v432_v18 = vadd.f32 %v431_v15, %v351_v17 }
 0x180   : > { %821 = vtanh.f32 %v441_v16 }
 0x181   : > { %823 = vtanh.f32 %v432_v18 }
 0x18d   : > { %v822_v19 = vpop.eup %821 }
 0x18e   : > { %v443_v20 = vmul.f32 0.5, %v822_v19  ;;  %v824_v22 = vpop.eup %823 }
 0x190   : > { %v444_v21 = vadd.f32 0.5, %v443_v20 }
 0x192   : > { %v445_v23 = vmul.f32 %v824_v22, %v444_v21 }
 0x194   : > { %739 = vmatpush3.msra.mxu1 %v445_v23 }
 0x195   : > { %741 = vmatmul.mubr.msk.f32.vlgmr.msra.gmra.mxu1 %vm447_vm3, %v446_v24 }
 0x255   : > { %v517_v26 = vpop.f32.mrf.mxu1 }
 0x256   : > { %529 = vst.msk [vmem:[%s330_s0 - $0x4] sm:$0xf0] %vm528_vm4, %v517_v26  ;;  %v525_v27 = vadd.f32 %v523_v25, %v517_v26 }
 0x257   : > { %v742_v28 = vpop.f32.mrf.mxu1 }
 0x258   : > { %894 = shalt.err (!%p891_p6)
}
 0x259   : > { %s895_s29 = scalar_lea.hbm %s1194_s9, 64  ;;  %s899_s24 = scalar_lea.hbm %s1279_s6, 128 }
 0x25a   : > { %p896_p7 = scmp.ne.s32.totalorder %s1194_s9, %s895_s29  ;;  %p900_p4 = scmp.lt.s32.totalorder %s1194_s9, %s1279_s6 }
 0x25b   : > { %p901_p10 = scmp.lt.s32.totalorder %s899_s24, %s895_s29 }
 0x25c   : > { %p897_p1 = pnand %p896_p7, %p1091_p9 }
 0x25d   : > { %p902_p8 = por %p901_p10, %p900_p4 }
 0x25e   : > { %p898_p2 = pneg %p897_p1 }
 0x260   : > { %p903_p0 = pnand %p902_p8, %p898_p2 }
 0x262   : > { %906 = shalt.err (!%p903_p0)
}
 0x263   : > { %748 = dma.vmem_to_hbm [thread:$0]  (%p1091_p9), %s1196_s27, 64, %s1194_s9, %s536_s18   ;;  %527 = vst.msk [vmem:[%s323_s17] sm:$0xf] %vm526_vm5, %v525_v27 }
 0x264   : > { %s531_s20 = scalar_lea.sflag [#allocation4], %s1148_s13  ;;  %s907_s15 = scalar_lea.vmem %s1203_s19, 64 }
 0x265   : > { %p908_p3 = scmp.ne.s32.totalorder %s1203_s19, %s907_s15  ;;  %s1004_s8 = smov [#allocation7]  }
 0x266   : > { %s911_s29 = sshll.u32 %s1004_s8, 4  ;;  %s912_s29 = int_to_ptr.vmem [resolvable:$false] %s911_s29 }
 0x267   : > { %p909_p13 = pnand %p908_p3, %p1091_p9  ;;  %s913_s0 = scalar_lea.vmem %s912_s29, 128 }
 0x268   : > { %p914_p12 = scmp.lt.s32.totalorder %s1203_s19, %s912_s29  ;;  %p915_p6 = scmp.lt.s32.totalorder %s913_s0, %s907_s15 }
 0x269   : > { %p910_p5 = pneg %p909_p13 }
 0x26a   : > { %p916_p7 = por %p915_p6, %p914_p12 }
 0x26c   : > { %p917_p1 = pnand %p916_p7, %p910_p5 }
 0x26e   : > { %920 = shalt.err (!%p917_p1)
}
 0x26f   : > { %s921_s14 = scalar_lea.hbm %s1201_s7, 64  ;;  %s925_s17 = scalar_lea.hbm %s1278_s5, 128 }
 0x270   : > { %p922_p2 = scmp.ne.s32.totalorder %s1201_s7, %s921_s14  ;;  %p926_p8 = scmp.lt.s32.totalorder %s1201_s7, %s1278_s5 }
 0x271   : > { %p927_p0 = scmp.lt.s32.totalorder %s925_s17, %s921_s14 }
 0x272   : > { %p923_p4 = pnand %p922_p2, %p1091_p9 }
 0x273   : > { %p928_p3 = por %p927_p0, %p926_p8 }
 0x274   : > { %p924_p10 = pneg %p923_p4 }
 0x276   : > { %p929_p13 = pnand %p928_p3, %p924_p10 }
 0x278   : > { %932 = shalt.err (!%p929_p13)
}
 0x279   : > { %747 = dma.vmem_to_hbm [thread:$0]  (%p1091_p9), %s1203_s19, 64, %s1201_s7, %s531_s20  }
 0x27a PF: > { %s576_s30 = sand.u32 1, %s975_s21   ;;  %p1290_p5 = scmp.ge.s32.totalorder %s995_s26, 2 }
 0x27b   : > { %s577_s24 = scalar_lea.sflag [#allocation4], %s576_s30 }
 0x27c   : > { %p759_p12 = pnand %p1290_p5, %p1098_p11 }
 0x27e   : > { %p760_p6 = pneg %p759_p12 }
 0x280   : > { %966 = dma.done.wait (%p760_p6), %s577_s24, 64  }
 0x281   : > { %968 = vsyncadd (%p760_p6), %s577_s24, 4294967232  ;;  %s586_s16 = scalar_lea.sflag [#allocation9], %s576_s30 }
 0x282   : > { %970 = dma.done.wait (%p760_p6), %s586_s16, 64  }
 0x283   : > { %972 = vsyncadd (%p760_p6), %s586_s16, 4294967232  ;;  %s29_s26 = sadd.s32 1, %s995_s26   ;;  %s1291_s10 = sld [smem:[#allocation14_spill]] }
 0x284   : > { %p26_p7 = scmp.ge.s32.totalorder %s29_s26, 4   ;;  %s1292_s21 = smov %s979_s22 }
 0x285   : > { %s1293_s22 = smov %s983_s23  ;;  %s1294_s23 = smov %s1096_s11 }
 0x286   : > { %s1295_s24 = smov %s991_s25  ;;  %28 = sbr.rel (!%p26_p7) target bundleno = 12 (0xc), region = 115 }
 0x289   : > { %s1296_s25 = smov %s1291_s10 }
 0x28b   :  { %591 = vsyncpa [#allocation3], 1 }
 0x28c   :  { %593 = vsyncpa [#allocation3 + $0x1], 1 }
 0x28d   :  { %594 = vsyncpa [#allocation6], 1 }
 0x28e   :  { %596 = vsyncpa [#allocation6 + $0x1], 1 }
 0x28f   :  { %597 = vsyncpa [#allocation4], 1 }
 0x290   :  { %599 = vsyncpa [#allocation4 + $0x1], 1 }
 0x291   :  { %600 = vsyncpa [#allocation9], 1 }
 0x292   :  { %602 = vsyncpa [#allocation9 + $0x1], 1 }

</bundles_post_ra>
